<compile_context>
chip_gen: v5e
topology: v5e:2x2
jax: 0.10.0
libtpu: 0.0.40
codegen_flags: <defaults>
</compile_context>

<pallas_src>
import jax
import jax.numpy as jnp
from jax.experimental import pallas as pl
from jax.experimental.pallas import tpu as pltpu


def _dma_copy_kernel(x_hbm, o_hbm, sem):
    """Copy chunk `i` of the (untiled) HBM input to the HBM output via DMA."""
    i = pl.program_id(0)
    cp = pltpu.make_async_copy(x_hbm.at[i], o_hbm.at[i], sem)
    cp.start()
    cp.wait()


def _pallas_identity_copy(x, *, max_chunks=2):
    """Materialized identity: direct HBM->HBM DMA copy through Pallas."""
    total = x.size
    if total == 0:
        return x

    # Split into `max_chunks` equal chunks so each TensorCore (v7x megacore)
    # issues its own DMA; fall back to one whole-tensor DMA otherwise.
    if max_chunks > 1 and total % max_chunks == 0 and total >= max_chunks * 128:
        num_chunks = max_chunks
    else:
        num_chunks = 1
    chunk = total // num_chunks

    # reshape of a contiguous array is a free metadata op (no HBM pass).
    x2d = x.reshape(num_chunks, chunk)

    out2d = pl.pallas_call(
        _dma_copy_kernel,
        out_shape=jax.ShapeDtypeStruct((num_chunks, chunk), x.dtype),
        grid=(num_chunks,),
        in_specs=[pl.BlockSpec(memory_space=pl.ANY)],
        out_specs=pl.BlockSpec(memory_space=pl.ANY),
        scratch_shapes=[pltpu.SemaphoreType.DMA(())],
        compiler_params=pltpu.CompilerParams(
            dimension_semantics=("parallel",)),
    )(x2d)

    return out2d.reshape(x.shape)


def none_adapter(x, *, materialize=False):
    """NoneAdapter.forward: identity.

    By default returns the input unchanged (no kernel, no HBM traffic).
    With materialize=True, produces a fresh buffer via an HBM->HBM DMA copy
    kernel (useful when a distinct output allocation is required).
    """
    if not materialize:
        return x
    return _pallas_identity_copy(x)


if __name__ == "__main__":
    key = jax.random.PRNGKey(0)
    k1, k2 = jax.random.split(key)

    # Small shapes consistent with an adapter module: batch=2, seq=8, hidden=32.
    batch, seq, hidden = 2, 8, 32
    x = jax.random.normal(k1, (batch, seq, hidden), dtype=jnp.float32)

    # Default (short-circuit) path.
    out0 = jax.block_until_ready(none_adapter(x))
    assert out0.shape == x.shape and out0.dtype == x.dtype
    assert jnp.array_equal(out0, x)

    # Materialized path: 2-chunk HBM->HBM DMA copy kernel.
    out1 = jax.block_until_ready(none_adapter(x, materialize=True))
    assert out1.shape == x.shape and out1.dtype == x.dtype
    assert jnp.array_equal(out1, x)

    # Odd-sized bf16 input exercising the single-chunk fallback (no padding,
    # no trailing slice, non-f32 dtype).
    y = jax.random.normal(k2, (3, 7, 37), dtype=jnp.bfloat16)
    out2 = jax.block_until_ready(none_adapter(y, materialize=True))
    assert out2.shape == y.shape and out2.dtype == y.dtype
    assert jnp.array_equal(out2, y)

    print("KERNEL_OK")
</pallas_src>

<mosaic_0001>
module attributes {stable_mosaic.version = 11 : i64} {
  func.func @_dma_copy_kernel(%arg0: i32, %arg1: memref<2x256xf32, #tpu.memory_space<any>>, %arg2: memref<2x256xf32, #tpu.memory_space<any>>, %arg3: memref<!tpu.dma_semaphore, #tpu.memory_space<semaphore_mem>>) attributes {dimension_semantics = [#tpu.dimension_semantics<parallel>], iteration_bounds = array<i64: 2>, scalar_prefetch = 0 : i64, scratch_operands = 1 : i64, tpu.core_type = #tpu.core_type<tc>, window_params = [{}, {}]} {
    %c0_i32 = arith.constant 0 : i32
    %0 = tpu.memref_slice %arg1[%arg0, %c0_i32] : memref<2x256xf32, #tpu.memory_space<any>> -> memref<1x256xf32, #tpu.memory_space<any>>
    %1 = tpu.memref_squeeze %0 : memref<1x256xf32, #tpu.memory_space<any>> -> memref<256xf32, #tpu.memory_space<any>>
    %c0_i32_0 = arith.constant 0 : i32
    %2 = tpu.memref_slice %arg2[%arg0, %c0_i32_0] : memref<2x256xf32, #tpu.memory_space<any>> -> memref<1x256xf32, #tpu.memory_space<any>>
    %3 = tpu.memref_squeeze %2 : memref<1x256xf32, #tpu.memory_space<any>> -> memref<256xf32, #tpu.memory_space<any>>
    tpu.enqueue_dma source(%1 : memref<256xf32, #tpu.memory_space<any>>) target(%3 : memref<256xf32, #tpu.memory_space<any>>) target_semaphore(%arg3 : memref<!tpu.dma_semaphore, #tpu.memory_space<semaphore_mem>>)
    %c0_i32_1 = arith.constant 0 : i32
    %4 = tpu.memref_slice %arg1[%arg0, %c0_i32_1] : memref<2x256xf32, #tpu.memory_space<any>> -> memref<1x256xf32, #tpu.memory_space<any>>
    %5 = tpu.memref_squeeze %4 : memref<1x256xf32, #tpu.memory_space<any>> -> memref<256xf32, #tpu.memory_space<any>>
    %c0_i32_2 = arith.constant 0 : i32
    %6 = tpu.memref_slice %arg2[%arg0, %c0_i32_2] : memref<2x256xf32, #tpu.memory_space<any>> -> memref<1x256xf32, #tpu.memory_space<any>>
    %7 = tpu.memref_squeeze %6 : memref<1x256xf32, #tpu.memory_space<any>> -> memref<256xf32, #tpu.memory_space<any>>
    tpu.wait_dma2 semaphore(%arg3 : memref<!tpu.dma_semaphore, #tpu.memory_space<semaphore_mem>>) src(%5 : memref<256xf32, #tpu.memory_space<any>>) dst(%7 : memref<256xf32, #tpu.memory_space<any>>)
    return
  }
}

</mosaic_0001>

<bundles_post_ra>
// kernel: tpu_custom_call.1
= control target key start
LH: loop header
LB: loop body
LE: loop exit
PB: predicated region body
PF: predicated region fallthrough
CT: control target
= control target key end

     0   :  { %s77_s6 = smov 0   ;;  %s102_s0 = inlined_call_operand.hbm [shape: f32[2,256], index: 0, kind: input, shape index: {}]   ;;  %s103_s1 = inlined_call_operand.hbm [shape: f32[2,256], index: 1, kind: output, shape index: {}]  }
   0x1 LB: > { %s13_s7 = sshrl.u32 %s79_s6, 1  ;;  %s14_s8 = sand.u32 1, %s79_s6   ;;  %s79_s6 = sphi %s77_s6, %s11_s6  }
   0x2   : > { %s56_s9 = sshll.u32 %s13_s7, 2  ;;  %s81_s11 = smov 32  }
   0x3   : > { %s16_s10 = sadd.s32 %s56_s9, %s14_s8  ;;  %30 = sst [smem:[#allocation4]] %s81_s11 }
   0x4   : > { %s17_s14 = scalar_lea.hbm %s102_s0, %s16_s10  ;;  %s18_s17 = scalar_lea.hbm %s103_s1, %s16_s10 }
   0x5   : > { %s23_s18 = sshll.u32 %s17_s14, 4  ;;  %s25_s19 = sshll.u32 %s18_s17, 4  ;;  %s24_s18 = int_to_ptr.hbm [resolvable:$true] %s23_s18  ;;  %s26_s19 = int_to_ptr.hbm [resolvable:$true] %s25_s19 }
   0x6   : > { %32 = sst [smem:[#allocation4 + $0x1]] %s81_s11  ;;  %s82_s20 = smov 1  }
   0x7   : > { %34 = sst [smem:[#allocation4 + $0x2]] %s82_s20  ;;  %s83_s21 = smov [#allocation2]  }
   0x8   : > { %s84_s22 = smov [#allocation3]   ;;  %s85_s23 = smov 0  }
   0x9   : > { %36 = dma.general %s24_s18, 32, %s26_s19, %s83_s21, %s84_s22, [#allocation4], %s85_s23, 0  }
   0xa   : > { %75 = dma.done.wait [#allocation2], 32 }
   0xb   : > { %76 = vsyncadd [#allocation2], 4294967264  ;;  %s11_s6 = sadd.s32 1, %s79_s6  }
   0xc   : > { %p8_p0 = scmp.ge.s32.totalorder %s11_s6, 2  }
   0xe   :  { %10 = sbr.rel (!%p8_p0) target bundleno = 1 (0x1), region = 23 }
  0x13   :  { %39 = vsyncmov [#allocation2] }
  0x16   :  { %s40_s24 = vpop.sfrf %39 }
  0x17   :  { %p57_p1 = scmp.ne.s32.totalorder %s40_s24, 0 }
  0x19   :  { %44 = shalt.err (%p57_p1)  }

</bundles_post_ra>
